<compile_context>
chip_gen: v6e
topology: v6e:2x2x1
jax: 0.10.0
libtpu: 0.0.40
codegen_flags: <defaults>
</compile_context>

<pallas_src>
import functools

import jax
import jax.numpy as jnp
from jax.experimental import pallas as pl
from jax.experimental.pallas import tpu as pltpu

_LANES = 128
_SUBLANES = 8


def _round_up(x: int, m: int) -> int:
    return ((x + m - 1) // m) * m


def _bitvector_gs_kernel(x_ref, w_ref, b_ref, noise_ref,
                         sample_ref, scores_ref, ent_ref,
                         *, inv_temperature: float, n_bits: int,
                         straight_through: bool):
    # ---- agent forward: linear layer on the MXU (bf16 in, f32 accumulate) ----
    scores = jnp.dot(x_ref[...], w_ref[...],
                     preferred_element_type=jnp.float32) + b_ref[...]
    scores_ref[...] = scores

    # ---- RelaxedBernoulli(logits=scores, temperature).rsample() --------------
    relaxed = jax.nn.sigmoid((scores + noise_ref[...]) * inv_temperature)
    if straight_through:
        # forward value of: relaxed + stop_grad(hard - relaxed)  ==  hard
        hard = (relaxed > 0.5).astype(jnp.float32)
        sample = relaxed + jax.lax.stop_gradient(hard - relaxed)
    else:
        sample = relaxed
    sample_ref[...] = sample

    # ---- Bernoulli(logits=scores).entropy().sum(-1) ---------------------------
    # H(l) = p*softplus(-l) + (1-p)*softplus(l)  ==  softplus(-l) + (1-p)*l
    p = jax.nn.sigmoid(scores)
    sp_neg = jnp.logaddexp(0.0, -scores)          # softplus(-l) = -log(p)
    ent_elem = sp_neg + (1.0 - p) * scores
    lane = jax.lax.broadcasted_iota(jnp.int32, ent_elem.shape, dimension=1)
    ent_elem = jnp.where(lane < n_bits, ent_elem, 0.0)   # drop padded lanes
    ent_ref[...] = jnp.sum(ent_elem, axis=-1, keepdims=True)


def bitvector_gumbel_softmax_forward(x, w, b, key,
                                     temperature: float = 1.0,
                                     straight_through: bool = False,
                                     block_b: int = 256,
                                     matmul_dtype=jnp.bfloat16):
    """Returns (sample [B, n_bits], scores [B, n_bits], entropy [B])."""
    B, F = x.shape
    N = w.shape[1]

    n_pad = _round_up(N, _LANES)                                    # lane-dense
    tb = min(_round_up(block_b, _SUBLANES), _round_up(B, _SUBLANES))
    b_pad = _round_up(B, tb)
    grid = (b_pad // tb,)

    x_p = jnp.zeros((b_pad, F), matmul_dtype).at[:B, :].set(x.astype(matmul_dtype))
    w_p = jnp.zeros((F, n_pad), matmul_dtype).at[:, :N].set(w.astype(matmul_dtype))
    b_p = jnp.zeros((1, n_pad), jnp.float32).at[:, :N].set(b.astype(jnp.float32))
    # logistic_noise = log(u) - log(1-u), u ~ U(0,1)  (RelaxedBernoulli rsample)
    noise = jax.random.logistic(key, (b_pad, n_pad), dtype=jnp.float32)

    kernel = functools.partial(
        _bitvector_gs_kernel,
        inv_temperature=float(1.0 / temperature),
        n_bits=int(N),
        straight_through=bool(straight_through))

    sample, scores, ent = pl.pallas_call(
        kernel,
        out_shape=(jax.ShapeDtypeStruct((b_pad, n_pad), jnp.float32),
                   jax.ShapeDtypeStruct((b_pad, n_pad), jnp.float32),
                   jax.ShapeDtypeStruct((b_pad, 1), jnp.float32)),
        grid=grid,
        in_specs=[
            pl.BlockSpec((tb, F), lambda i: (i, 0)),       # x      (streamed)
            pl.BlockSpec((F, n_pad), lambda i: (0, 0)),    # W      (resident)
            pl.BlockSpec((1, n_pad), lambda i: (0, 0)),    # bias   (resident)
            pl.BlockSpec((tb, n_pad), lambda i: (i, 0)),   # noise  (streamed)
        ],
        out_specs=(
            pl.BlockSpec((tb, n_pad), lambda i: (i, 0)),   # sample
            pl.BlockSpec((tb, n_pad), lambda i: (i, 0)),   # scores
            pl.BlockSpec((tb, 1), lambda i: (i, 0)),       # entropy
        ),
        compiler_params=pltpu.CompilerParams(
            dimension_semantics=("parallel",)),
    )(x_p, w_p, b_p, noise)

    return sample[:B, :N], scores[:B, :N], ent[:B, 0]


if __name__ == "__main__":
    # Small shapes consistent with the module: batch=8, hidden=32, n_bits=16.
    B, F, N = 8, 32, 16
    key = jax.random.PRNGKey(0)
    kx, kw, kb, knoise = jax.random.split(key, 4)

    x = jax.random.normal(kx, (B, F), dtype=jnp.float32)
    # Deterministic "agent" parameters (linear layer producing Bernoulli logits).
    w = jax.random.normal(kw, (F, N), dtype=jnp.float32) * 0.1
    b = jax.random.normal(kb, (1, N), dtype=jnp.float32) * 0.1

    sample, scores, entropy = bitvector_gumbel_softmax_forward(
        x, w, b, knoise, temperature=1.0, straight_through=False)
    jax.block_until_ready((sample, scores, entropy))

    assert sample.shape == (B, N) and scores.shape == (B, N) and entropy.shape == (B,)

    # scores vs f32 reference (kernel matmul runs bf16-in / f32-accumulate).
    ref_scores = x @ w + b
    assert jnp.allclose(scores, ref_scores, atol=3e-2), \
        float(jnp.max(jnp.abs(scores - ref_scores)))

    # entropy formula check against the kernel's own scores (tight tolerance).
    p = jax.nn.sigmoid(scores)
    ref_ent = jnp.sum(p * jnp.logaddexp(0.0, -scores)
                      + (1.0 - p) * jnp.logaddexp(0.0, scores), axis=-1)
    assert jnp.allclose(entropy, ref_ent, atol=1e-4)

    # relaxed sample stays strictly inside (0, 1)
    assert bool(jnp.all((sample > 0.0) & (sample < 1.0)))

    # straight-through forward values are (numerically) hard bits
    st_sample, _, _ = bitvector_gumbel_softmax_forward(
        x, w, b, knoise, temperature=1.0, straight_through=True)
    jax.block_until_ready(st_sample)
    assert bool(jnp.all((st_sample < 1e-5) | (st_sample > 1.0 - 1e-5)))

    # TODO(synk): the surrounding Gumbel.forward loss/decoder/logging plumbing
    # stays in plain JAX on the host; only the encoder hot path is kernelized.
    print("KERNEL_OK")
</pallas_src>

<mosaic_0001>
module attributes {stable_mosaic.version = 11 : i64} {
  func.func @_bitvector_gs_kernel(%arg0: i32, %arg1: memref<8x32xbf16, #tpu.memory_space<vmem>>, %arg2: memref<32x128xbf16, #tpu.memory_space<vmem>>, %arg3: memref<1x128xf32, #tpu.memory_space<vmem>>, %arg4: memref<8x128xf32, #tpu.memory_space<vmem>>, %arg5: memref<8x128xf32, #tpu.memory_space<vmem>>, %arg6: memref<8x128xf32, #tpu.memory_space<vmem>>, %arg7: memref<8x1xf32, #tpu.memory_space<vmem>>) attributes {dimension_semantics = [#tpu.dimension_semantics<parallel>], iteration_bounds = array<i64: 1>, scalar_prefetch = 0 : i64, scratch_operands = 0 : i64, tpu.core_type = #tpu.core_type<tc>, window_params = [{transform_indices = @transform_0, window_bounds = array<i64: 8, 32>}, {pipeline_mode = #tpu.pipeline_mode<synchronous>, transform_indices = @transform_1, window_bounds = array<i64: 32, 128>}, {pipeline_mode = #tpu.pipeline_mode<synchronous>, transform_indices = @transform_2, window_bounds = array<i64: 1, 128>}, {transform_indices = @transform_3, window_bounds = array<i64: 8, 128>}, {transform_indices = @transform_4, window_bounds = array<i64: 8, 128>}, {transform_indices = @transform_5, window_bounds = array<i64: 8, 128>}, {transform_indices = @transform_6, window_bounds = array<i64: 8, 1>}]} {
    %c0 = arith.constant 0 : index
    %c0_0 = arith.constant 0 : index
    %0 = vector.load %arg1[%c0, %c0_0] : memref<8x32xbf16, #tpu.memory_space<vmem>>, vector<8x32xbf16>
    %c0_1 = arith.constant 0 : index
    %c0_2 = arith.constant 0 : index
    %1 = vector.load %arg2[%c0_1, %c0_2] : memref<32x128xbf16, #tpu.memory_space<vmem>>, vector<32x128xbf16>
    %cst = arith.constant dense<0.000000e+00> : vector<8x128xf32>
    %2 = tpu.matmul %0, %1, %cst {dimension_numbers = #tpu.dot_dimension_numbers<[1], [0], [0], [1], [0, 0, 1, 1], [], []>} : vector<8x32xbf16>, vector<32x128xbf16>, vector<8x128xf32> -> vector<8x128xf32>
    %c0_3 = arith.constant 0 : index
    %c0_4 = arith.constant 0 : index
    %3 = vector.load %arg3[%c0_3, %c0_4] : memref<1x128xf32, #tpu.memory_space<vmem>>, vector<1x128xf32>
    %4 = vector.broadcast %3 : vector<1x128xf32> to vector<8x128xf32>
    %5 = arith.addf %2, %4 : vector<8x128xf32>
    %c0_5 = arith.constant 0 : index
    %c0_6 = arith.constant 0 : index
    %6 = vector.load %arg6[%c0_5, %c0_6] : memref<8x128xf32, #tpu.memory_space<vmem>>, vector<8x128xf32>
    tpu.vector_store %arg6[%c0_5, %c0_6], %5 {strides = array<i32>} : memref<8x128xf32, #tpu.memory_space<vmem>>, vector<8x128xf32>,
    %c0_7 = arith.constant 0 : index
    %c0_8 = arith.constant 0 : index
    %7 = vector.load %arg4[%c0_7, %c0_8] : memref<8x128xf32, #tpu.memory_space<vmem>>, vector<8x128xf32>
    %8 = arith.addf %5, %7 : vector<8x128xf32>
    %cst_9 = arith.constant 1.000000e+00 : f32
    %9 = vector.broadcast %cst_9 : f32 to vector<8x128xf32>
    %10 = arith.mulf %8, %9 : vector<8x128xf32>
    %11 = arith.negf %10 : vector<8x128xf32>
    %12 = math.exp %11 : vector<8x128xf32>
    %cst_10 = arith.constant 1.000000e+00 : f32
    %13 = vector.broadcast %cst_10 : f32 to vector<8x128xf32>
    %14 = arith.addf %13, %12 : vector<8x128xf32>
    %15 = arith.divf %13, %14 : vector<8x128xf32>
    %c0_11 = arith.constant 0 : index
    %c0_12 = arith.constant 0 : index
    %16 = vector.load %arg5[%c0_11, %c0_12] : memref<8x128xf32, #tpu.memory_space<vmem>>, vector<8x128xf32>
    tpu.vector_store %arg5[%c0_11, %c0_12], %15 {strides = array<i32>} : memref<8x128xf32, #tpu.memory_space<vmem>>, vector<8x128xf32>,
    %17 = arith.negf %5 : vector<8x128xf32>
    %18 = math.exp %17 : vector<8x128xf32>
    %cst_13 = arith.constant 1.000000e+00 : f32
    %19 = vector.broadcast %cst_13 : f32 to vector<8x128xf32>
    %20 = arith.addf %19, %18 : vector<8x128xf32>
    %21 = arith.divf %19, %20 : vector<8x128xf32>
    %cst_14 = arith.constant 0.000000e+00 : f32
    %22 = vector.broadcast %cst_14 : f32 to vector<8x128xf32>
    %23 = arith.subf %22, %5 : vector<8x128xf32>
    %cst_15 = arith.constant 0.000000e+00 : f32
    %24 = vector.broadcast %cst_15 : f32 to vector<8x128xf32>
    %25 = arith.maximumf %24, %23 : vector<8x128xf32>
    %26 = vector.broadcast %cst_15 : f32 to vector<8x128xf32>
    %27 = arith.subf %26, %23 : vector<8x128xf32>
    %28 = arith.cmpf one, %27, %27 : vector<8x128xf32>
    %29 = vector.broadcast %cst_15 : f32 to vector<8x128xf32>
    %30 = arith.addf %29, %23 : vector<8x128xf32>
    %31 = math.absf %27 : vector<8x128xf32>
    %cst_16 = arith.constant 0.000000e+00 : f32
    %32 = vector.broadcast %cst_16 : f32 to vector<8x128xf32>
    %33 = arith.subf %32, %31 : vector<8x128xf32>
    %34 = math.exp %33 : vector<8x128xf32>
    %35 = math.log1p %34 : vector<8x128xf32>
    %36 = arith.addf %25, %35 : vector<8x128xf32>
    %37 = arith.select %28, %30, %36 : vector<8x128xi1>, vector<8x128xf32>
    %cst_17 = arith.constant 1.000000e+00 : f32
    %38 = vector.broadcast %cst_17 : f32 to vector<8x128xf32>
    %39 = arith.subf %38, %21 : vector<8x128xf32>
    %40 = arith.mulf %39, %5 : vector<8x128xf32>
    %41 = arith.addf %37, %40 : vector<8x128xf32>
    %42 = tpu.iota {dimensions = array<i32: 1>} : vector<8x128xi32>
    %c16_i32 = arith.constant 16 : i32
    %43 = vector.broadcast %c16_i32 : i32 to vector<8x128xi32>
    %44 = arith.cmpi slt, %42, %43 : vector<8x128xi32>
    %cst_18 = arith.constant 0.000000e+00 : f32
    %45 = vector.broadcast %cst_18 : f32 to vector<8x128xf32>
    %46 = arith.select %44, %41, %45 : vector<8x128xi1>, vector<8x128xf32>
    %cst_19 = arith.constant dense<0.000000e+00> : vector<8xf32>
    %47 = vector.multi_reduction <add>, %46, %cst_19 [1] : vector<8x128xf32> to vector<8xf32>
    %48 = vector.shape_cast %47 : vector<8xf32> to vector<8x1xf32>
    %c0_20 = arith.constant 0 : index
    %c0_21 = arith.constant 0 : index
    %49 = vector.load %arg7[%c0_20, %c0_21] : memref<8x1xf32, #tpu.memory_space<vmem>>, vector<8x1xf32>
    tpu.vector_store %arg7[%c0_20, %c0_21], %48 {strides = array<i32>} : memref<8x1xf32, #tpu.memory_space<vmem>>, vector<8x1xf32>,
    return
  }
  func.func @transform_0(%arg0: i32) -> (i32, i32) {
    %c0_i32 = arith.constant 0 : i32
    %c0_i32_0 = arith.constant 0 : i32
    return %arg0, %c0_i32 : i32, i32
  }
  func.func @transform_1(%arg0: i32) -> (i32, i32) {
    %c0_i32 = arith.constant 0 : i32
    %c0_i32_0 = arith.constant 0 : i32
    %c0_i32_1 = arith.constant 0 : i32
    return %c0_i32, %c0_i32_0 : i32, i32
  }
  func.func @transform_2(%arg0: i32) -> (i32, i32) {
    %c0_i32 = arith.constant 0 : i32
    %c0_i32_0 = arith.constant 0 : i32
    %c0_i32_1 = arith.constant 0 : i32
    return %c0_i32, %c0_i32_0 : i32, i32
  }
  func.func @transform_3(%arg0: i32) -> (i32, i32) {
    %c0_i32 = arith.constant 0 : i32
    %c0_i32_0 = arith.constant 0 : i32
    return %arg0, %c0_i32 : i32, i32
  }
  func.func @transform_4(%arg0: i32) -> (i32, i32) {
    %c0_i32 = arith.constant 0 : i32
    %c0_i32_0 = arith.constant 0 : i32
    return %arg0, %c0_i32 : i32, i32
  }
  func.func @transform_5(%arg0: i32) -> (i32, i32) {
    %c0_i32 = arith.constant 0 : i32
    %c0_i32_0 = arith.constant 0 : i32
    return %arg0, %c0_i32 : i32, i32
  }
  func.func @transform_6(%arg0: i32) -> (i32, i32) {
    %c0_i32 = arith.constant 0 : i32
    %c0_i32_0 = arith.constant 0 : i32
    return %arg0, %c0_i32 : i32, i32
  }
}

</mosaic_0001>

<bundles_post_ra>
// kernel: tpu_custom_call.1
= control target key start
LH: loop header
LB: loop body
LE: loop exit
PB: predicated region body
PF: predicated region fallthrough
CT: control target
= control target key end

     0   :  { %12 = vsyncpa [#allocation3], 0  ;;  %s422_s0 = inlined_call_operand.hbm [shape: bf16[8,32], index: 0, kind: input, shape index: {}]   ;;  %s423_s1 = inlined_call_operand.hbm [shape: bf16[32,128], index: 1, kind: input, shape index: {}]   ;;  %s424_s2 = inlined_call_operand.vmem [shape: f32[1,128], index: 2, kind: input, shape index: {}]   ;;  %s425_s3 = inlined_call_operand.hbm [shape: f32[8,128], index: 3, kind: input, shape index: {}]   ;;  %s426_s4 = inlined_call_operand.hbm [shape: f32[8,128], index: 4, kind: output, shape index: {0}]   ;;  %s427_s5 = inlined_call_operand.hbm [shape: f32[8,128], index: 5, kind: output, shape index: {1}]   ;;  %s428_s6 = inlined_call_operand.vmem [shape: f32[8,1], index: 6, kind: output, shape index: {2}]  }
   0x1   :  { %13 = vsyncpa [#allocation6], 0 }
   0x2   :  { %14 = vsyncpa [#allocation4], 0 }
   0x3   :  { %15 = vsyncpa [#allocation10], 0  ;;  %s357_s21 = smov [#allocation5]  }
   0x4   :  { %s31_s22 = sshll.u32 %s357_s21, 4  ;;  %s32_s22 = int_to_ptr.vmem [resolvable:$true] %s31_s22 }
   0x5   :  { %s257_s23 = scalar_lea.vmem %s32_s22, 256  ;;  %p262_p1 = scmp.lt.s32.totalorder %s32_s22, %s32_s22 }
   0x6   :  { %p258_p0 = scmp.ne.s32.totalorder %s32_s22, %s257_s23  ;;  %p263_p2 = scmp.lt.s32.totalorder %s257_s23, %s257_s23 }
   0x8   :  { %p264_p3 = por %p263_p2, %p262_p1 }
   0xa   :  { %p265_p4 = pnand %p264_p3, %p258_p0 }
   0xc   :  { %268 = shalt.err (!%p265_p4)
}
   0xd   :  { %s358_s24 = smov 64   ;;  %s359_s25 = smov 4  }
   0xe   :  { %37 = dma.hbm_to_vmem [thread:$0]  %s423_s1, 256, %s32_s22, [#allocation6], %s358_s24, %s358_s24, %s359_s25  }
   0xf   :  { %s360_s28 = smov [#allocation2]   ;;  %s361_s30 = smov [#allocation7]  }
  0x10   :  { %s22_s29 = sshll.u32 %s360_s28, 4  ;;  %s46_s7 = sshll.u32 %s361_s30, 4  ;;  %s23_s29 = int_to_ptr.vmem [resolvable:$true] %s22_s29  ;;  %s47_s7 = int_to_ptr.vmem [resolvable:$true] %s46_s7 }
  0x11   :  { %s277_s8 = scalar_lea.vmem %s23_s29, 64  ;;  %p282_p6 = scmp.lt.s32.totalorder %s23_s29, %s23_s29 }
  0x12   :  { %p278_p5 = scmp.ne.s32.totalorder %s23_s29, %s277_s8  ;;  %p283_p7 = scmp.lt.s32.totalorder %s277_s8, %s277_s8 }
  0x14   :  { %p284_p8 = por %p283_p7, %p282_p6 }
  0x16   :  { %p285_p9 = pnand %p284_p8, %p278_p5 }
  0x18   :  { %288 = shalt.err (!%p285_p9)
}
  0x19   :  { %25 = dma.hbm_to_vmem [thread:$0]  %s422_s0, 64, %s23_s29, [#allocation3]  }
  0x1a   :  { %s297_s11 = scalar_lea.vmem %s47_s7, 128  ;;  %p302_p11 = scmp.lt.s32.totalorder %s47_s7, %s47_s7 }
  0x1b   :  { %p298_p10 = scmp.ne.s32.totalorder %s47_s7, %s297_s11  ;;  %p303_p12 = scmp.lt.s32.totalorder %s297_s11, %s297_s11 }
  0x1d   :  { %p304_p13 = por %p303_p12, %p302_p11 }
  0x1f   :  { %p305_p0 = pnand %p304_p13, %p298_p10 }
  0x21   :  { %308 = shalt.err (!%p305_p0)
}
  0x22   :  { %49 = dma.hbm_to_vmem [thread:$0]  %s425_s3, 128, %s47_s7, [#allocation6]  }
  0x23   :  { %349 = dma.done.wait [#allocation3], 64  }
  0x24   :  { %350 = vsyncadd [#allocation3], 4294967232 }
  0x25   :  { %351 = dma.done.wait [#allocation6], 384  }
  0x26   :  { %352 = vsyncadd [#allocation6], 4294966912  ;;  %v362_v0 = vmov 0.0   ;;  %vm363_vm0 = vmmov 0   ;;  %v235_v1 = vld [vmem:[#allocation5 + $0x8] sm:$0xff]   ;;  %v236_v2 = vld [vmem:[#allocation5] sm:$0xff]   ;;  %v167_v30 = vlaneseq }
  0x27   :  { %218 = vmatprep.subr.bf16.mxu0 %v362_v0  ;;  %222 = vmatprep.mubr.msk.bf16.mxu0 %vm363_vm0, %v362_v0  ;;  %v60_v3 = vld [vmem:[#allocation2] sm:$0xf]  ;;  %vm84_vm1 = vcmask 261120   ;;  %v129_v6 = vld [vmem:[#allocation7] sm:$0xff]  ;;  %s365_s14 = smov [#allocation9]  }
  0x28   :  { %219 = vmatpush3.bf16.msra.mxu0 %v235_v1  ;;  %v209_v4 = vld [vmem:[%s424_s2] ss:$0 sm:$0xff]  ;;  %v168_v36 = vand.u32 127, %v167_v30  ;;  %s364_s2 = smov [#allocation8]   ;;  %s191_s15 = sshll.u32 %s365_s14, 4  ;;  %s192_s15 = int_to_ptr.vmem [resolvable:$true] %s191_s15 }
  0x29   :  { %220 = vmatprep.subr.bf16.mxu0 %v362_v0  ;;  %s181_s3 = sshll.u32 %s364_s2, 4  ;;  %s182_s3 = int_to_ptr.vmem [resolvable:$true] %s181_s3 }
  0x2a   :  { %vm169_vm4 = vcmp.lt.s32.totalorder %v168_v36, 16  ;;  %s309_s16 = scalar_lea.vmem %s182_s3, 128  ;;  %p314_p2 = scmp.lt.s32.totalorder %s182_s3, %s182_s3 }
  0x2b   :  { %p310_p1 = scmp.ne.s32.totalorder %s182_s3, %s309_s16  ;;  %p315_p3 = scmp.lt.s32.totalorder %s309_s16, %s309_s16 }
  0x2c   :  { %221 = vmatpush3.bf16.msra.mxu0 %v236_v2 }
  0x2d   :  { %p316_p4 = por %p315_p3, %p314_p2 }
  0x2f   :  { %223 = vmatmul.mubr.msk.bf16.vlgmr.msra.gmra.mxu0 %vm84_vm1, %v60_v3  ;;  %p317_p5 = pnand %p316_p4, %p310_p1 }
  0xef   :  { %v122_v5 = vpop.f32.mrf.mxu0 }
  0xf0   :  { %v123_v7 = vadd.f32 %v209_v4, %v122_v5 }
  0xf1   :  { %v224_v8 = vpop.f32.mrf.mxu0 }
  0xf2   :  { %v130_v9 = vadd.f32 %v129_v6, %v123_v7  ;;  %v214_v10 = vmul.f32 -1.442695, %v123_v7  ;;  %128 = vst [vmem:[#allocation9] sm:$0xff] %v123_v7  ;;  %v144_v11 = vsub.f32 0.0, %v123_v7 }
  0xf3   :  { %v125_v12 = vpop.f32.mrf.mxu0 }
  0xf4   :  { %v213_v13 = vmul.f32 -1.442695, %v130_v9  ;;  %v146_v14 = vsub.f32 0.0, %v144_v11  ;;  %237 = vpow2.f32 %v214_v10  ;;  %v145_v35 = vmax.f32 %v144_v11, 0.0 }
  0xf5   :  { %v225_v15 = vpop.f32.mrf.mxu0 }
  0xf6   :  { %239 = vpow2.f32 %v213_v13  ;;  %v149_v16 = vand.u32 2147483647, %v146_v14  ;;  %vm147_vm3 = vcmp.ne.f32.partialorder %v146_v14, %v146_v14 }
  0xf8   :  { %v150_v17 = vsub.f32 0.0, %v149_v16 }
  0xfa   :  { %v151_v18 = vmul.f32 1.442695, %v150_v17 }
  0xfc   :  { %241 = vpow2.f32 %v151_v18 }
 0x101   :  { %v238_v19 = vpop.eup %237 }
 0x102   :  { %v141_v22 = vadd.f32 1.0, %v238_v19 }
 0x103   :  { %v240_v20 = vpop.eup %239 }
 0x104   :  { %v134_v21 = vadd.f32 1.0, %v240_v20 }
 0x106   :  { %243 = vrcp.f32 %v134_v21 }
 0x107   :  { %245 = vrcp.f32 %v141_v22 }
 0x109   :  { %v242_v23 = vpop.eup %241 }
 0x10a   :  { %v153_v24 = vadd.f32 1.0, %v242_v23  ;;  %v156_v25 = vmul.f32 -0.5, %v242_v23  ;;  %v159_v29 = vand.u32 2147483647, %v242_v23 }
 0x10c   :  { %247 = vlog2.f32 %v153_v24  ;;  %v157_v27 = vadd.f32 1.0, %v156_v25  ;;  %vm160_vm2 = vcmp.lt.f32.partialorder %v159_v29, 0.0004427343 }
 0x10e   :  { %v158_v33 = vmul.f32 %v242_v23, %v157_v27 }
 0x113   :  { %v244_v26 = vpop.eup %243 }
 0x114   :  { %137 = vst [vmem:[#allocation8] sm:$0xff] %v244_v26  ;;  %v246_v28 = vpop.eup %245 }
 0x115   :  { %v164_v34 = vsub.f32 1.0, %v246_v28 }
 0x117   :  { %v165_v39 = vmul.f32 %v164_v34, %v123_v7 }
 0x119   :  { %v248_v31 = vpop.eup %247 }
 0x11a   :  { %v155_v32 = vmul.f32 0.6931472, %v248_v31 }
 0x11c   :  { %v161_v37 = vsel %vm160_vm2, %v158_v33, %v155_v32 }
 0x11d   :  { %v162_v38 = vadd.f32 %v161_v37, %v145_v35 }
 0x11f   :  { %v163_v40 = vsel %vm147_vm3, %v144_v11, %v162_v38 }
 0x120   :  { %v166_v41 = vadd.f32 %v165_v39, %v163_v40 }
 0x122   :  { %v170_v42 = vsel %vm169_vm4, %v166_v41, 0.0 }
 0x123   :  { %171 = vadd.xlane.f32.xlu0 %v170_v42 }
 0x124   :  { %320 = shalt.err (!%p317_p5)
}
 0x125   :  { %184 = dma.vmem_to_hbm [thread:$0]  %s182_s3, 128, %s426_s4, [#allocation4]  }
 0x126   :  { %s329_s19 = scalar_lea.vmem %s192_s15, 128  ;;  %p334_p7 = scmp.lt.s32.totalorder %s192_s15, %s192_s15 }
 0x127   :  { %p330_p6 = scmp.ne.s32.totalorder %s192_s15, %s329_s19  ;;  %p335_p8 = scmp.lt.s32.totalorder %s329_s19, %s329_s19 }
 0x129   :  { %p336_p9 = por %p335_p8, %p334_p7 }
 0x12b   :  { %p337_p10 = pnand %p336_p9, %p330_p6 }
 0x12d   :  { %340 = shalt.err (!%p337_p10)
}
 0x12e   :  { %194 = dma.vmem_to_hbm [thread:$0]  %s192_s15, 128, %s427_s5, [#allocation10]   ;;  %vm173_vm5 = vcmask 7168  }
 0x1ac   :  { %v172_v43 = vpop.xlane.xlu0 %171 }
 0x1ad   :  { %174 = vst.msk [vmem:[%s428_s6] sm:$0xff] %vm173_vm5, %v172_v43 }
 0x1ae   :  { %353 = dma.done.wait [#allocation4], 128  }
 0x1af   :  { %354 = vsyncadd [#allocation4], 4294967168 }
 0x1b0   :  { %355 = dma.done.wait [#allocation10], 128  }
 0x1b1   :  { %356 = vsyncadd [#allocation10], 4294967168 }
 0x1b2   :  { %205 = vsyncpa [#allocation3], 1 }
 0x1b3   :  { %206 = vsyncpa [#allocation6], 1 }
 0x1b4   :  { %207 = vsyncpa [#allocation4], 1 }
 0x1b5   :  { %208 = vsyncpa [#allocation10], 1 }

</bundles_post_ra>
